<compile_context>
chip_gen: v7x
topology: tpu7x:2x2x1
jax: 0.10.0
libtpu: 0.0.40
codegen_flags: <defaults>
</compile_context>

<pallas_src>
import jax
import jax.numpy as jnp
from jax.experimental import pallas as pl
from jax.experimental.pallas import tpu as pltpu


def _round_up(x, m):
    return (x + m - 1) // m * m


def bce_forward_kernel(feats_ref, diffs_ref,
                       w1_ref, b1_ref,
                       w2a_ref, w2b_ref, b2_ref,
                       w3_ref, b3_ref,
                       out_ref):
    # ---- linear_head: Linear(768 -> 256) + ReLU (bf16 operands, f32 accumulate) ----
    h1 = jnp.dot(feats_ref[...], w1_ref[...], preferred_element_type=jnp.float32)
    h1 = jnp.maximum(h1 + b1_ref[...], 0.0)                              # (TB, 256) f32

    # ---- linear_head2[0..1]: Linear(257 -> 32) on cat([h1, diffs], 1) + ReLU ----
    # cat([h1, d]) @ W2^T == h1 @ W2a + d * W2b  (no (TB, 257) tensor materialized)
    h2 = jnp.dot(h1, w2a_ref[...], preferred_element_type=jnp.float32)
    h2 = jnp.maximum(h2 + diffs_ref[...] * w2b_ref[...] + b2_ref[...], 0.0)   # (TB, 32)

    # ---- linear_head2[2..3]: Linear(32 -> 1) + Sigmoid ----
    # N=1, K=32 matmul wastes an MXU push/pop; do it as VPU mul + cross-lane reduce.
    logit = jnp.sum(h2 * w3_ref[...], axis=-1, keepdims=True) + b3_ref[...]
    out_ref[...] = jax.nn.sigmoid(logit)                                  # (TB, 1)


def bce_grasp_forward(feats, diffs, params, *, tb=None):
    B, in_dim = feats.shape

    # Batch tile: MXU-friendly (multiple of 256 when batch is large), always a
    # multiple of 16 so both bf16 (16,128) and f32 (8,128) sublane tilings are legal.
    if tb is None:
        tb = 512 if B >= 512 else _round_up(max(B, 16), 16)
    Bp = _round_up(B, tb)
    if Bp != B:
        feats = jnp.pad(feats, ((0, Bp - B), (0, 0)))
        diffs = jnp.pad(diffs, ((0, Bp - B), (0, 0)))

    # bf16 operands for the big matmul; small weights kept in f32.
    feats_bf = feats.astype(jnp.bfloat16)
    w1 = params["w1"].astype(jnp.bfloat16)       # (768, 256)
    b1 = params["b1"]                            # (1, 256)  f32
    w2a = params["w2a"]                          # (256, 32) f32
    w2b = params["w2b"]                          # (1, 32)   f32
    b2 = params["b2"]                            # (1, 32)   f32
    w3 = params["w3"].reshape(1, -1)             # (1, 32)   f32 row for VPU reduce
    b3 = params["b3"]                            # (1, 1)    f32

    int_dim = w1.shape[1]
    out_dim = w2a.shape[1]

    tile = lambda shape: pl.BlockSpec(shape, lambda i: (i, 0))       # batch-tiled
    resident = lambda shape: pl.BlockSpec(shape, lambda i: (0, 0))   # VMEM-resident

    flops = 2 * Bp * (in_dim * int_dim + int_dim * out_dim + out_dim)
    bytes_accessed = (Bp * in_dim * 2            # feats (bf16)
                      + Bp * 4 + Bp * 4          # diffs + out (f32)
                      + in_dim * int_dim * 2     # w1 (bf16)
                      + int_dim * out_dim * 4    # w2a
                      + (int_dim + 3 * out_dim + 2) * 4)   # biases, w2b, w3, b3

    out = pl.pallas_call(
        bce_forward_kernel,
        out_shape=jax.ShapeDtypeStruct((Bp, 1), jnp.float32),
        grid=(Bp // tb,),
        in_specs=[
            tile((tb, in_dim)),          # feats
            tile((tb, 1)),               # diffs
            resident(w1.shape),
            resident(b1.shape),
            resident(w2a.shape),
            resident(w2b.shape),
            resident(b2.shape),
            resident(w3.shape),
            resident(b3.shape),
        ],
        out_specs=tile((tb, 1)),
        compiler_params=pltpu.CompilerParams(
            dimension_semantics=("parallel",),   # v7x: shard batch tiles over 2 TCs
            vmem_limit_bytes=32 << 20,           # leaves headroom on v7x's 64 MiB VMEM
        ),
        cost_estimate=pl.CostEstimate(
            flops=flops, transcendentals=Bp, bytes_accessed=bytes_accessed),
    )(feats_bf, diffs, w1, b1, w2a, w2b, b2, w3, b3)

    return out[:B]


def make_params(key, input_dim=768, int_dim=256, output_dim=32):
    """Deterministic synthetic parameters with the same shapes as the nn.Module.

    PyTorch Linear(in, out) stores weight (out, in); we store the transpose
    (in, out) so the kernel does x @ W directly.
    """
    ks = jax.random.split(key, 6)
    scale = 0.02
    w1 = scale * jax.random.normal(ks[0], (input_dim, int_dim), jnp.float32)
    b1 = scale * jax.random.normal(ks[1], (1, int_dim), jnp.float32)
    # Linear(int_dim + 1 -> output_dim): split into the int_dim part and the
    # single "diffs" column.
    w2_full = scale * jax.random.normal(ks[2], (int_dim + 1, output_dim), jnp.float32)
    w2a = w2_full[:int_dim, :]                      # (256, 32)
    w2b = w2_full[int_dim:, :]                      # (1, 32)
    b2 = scale * jax.random.normal(ks[3], (1, output_dim), jnp.float32)
    w3 = scale * jax.random.normal(ks[4], (output_dim, 1), jnp.float32)
    b3 = scale * jax.random.normal(ks[5], (1, 1), jnp.float32)
    return dict(w1=w1, b1=b1, w2a=w2a, w2b=w2b, b2=b2, w3=w3, b3=b3)


def reference_forward_f32(feats, diffs, p):
    h1 = jnp.maximum(feats @ p["w1"] + p["b1"], 0.0)
    h = jnp.concatenate([h1, diffs], axis=1)
    w2 = jnp.concatenate([p["w2a"], p["w2b"]], axis=0)
    h2 = jnp.maximum(h @ w2 + p["b2"], 0.0)
    return jax.nn.sigmoid(h2 @ p["w3"] + p["b3"])


def reference_forward_bf16(feats, diffs, p):
    h1 = jnp.dot(feats.astype(jnp.bfloat16), p["w1"].astype(jnp.bfloat16),
                 preferred_element_type=jnp.float32)
    h1 = jnp.maximum(h1 + p["b1"], 0.0)
    h = jnp.concatenate([h1, diffs], axis=1)
    w2 = jnp.concatenate([p["w2a"], p["w2b"]], axis=0)
    h2 = jnp.maximum(h @ w2 + p["b2"], 0.0)
    return jax.nn.sigmoid(h2 @ p["w3"] + p["b3"])


if __name__ == "__main__":
    key = jax.random.PRNGKey(0)
    k_feats, k_diffs, k_params = jax.random.split(key, 3)

    B, INPUT_DIM, INT_DIM, OUTPUT_DIM = 8, 768, 256, 32

    feats = jax.random.normal(k_feats, (B, INPUT_DIM), jnp.float32)
    diffs = jax.random.normal(k_diffs, (B, 1), jnp.float32)
    params = make_params(k_params, INPUT_DIM, INT_DIM, OUTPUT_DIM)

    out = jax.block_until_ready(bce_grasp_forward(feats, diffs, params))

    ref_bf = reference_forward_bf16(feats, diffs, params)   # matches kernel precision
    ref_32 = reference_forward_f32(feats, diffs, params)    # full-precision sanity

    assert out.shape == (B, 1)
    assert jnp.allclose(out, ref_bf, atol=1e-4, rtol=1e-4), "mismatch vs bf16 reference"
    assert jnp.allclose(out, ref_32, atol=1e-2, rtol=1e-2), "mismatch vs f32 reference"

    print("KERNEL_OK")
</pallas_src>

<mosaic_0001>
module attributes {stable_mosaic.version = 11 : i64} {
  func.func @bce_forward_kernel(%arg0: i32, %arg1: memref<16x768xbf16, #tpu.memory_space<vmem>>, %arg2: memref<16x1xf32, #tpu.memory_space<vmem>>, %arg3: memref<768x256xbf16, #tpu.memory_space<vmem>>, %arg4: memref<1x256xf32, #tpu.memory_space<vmem>>, %arg5: memref<256x32xf32, #tpu.memory_space<vmem>>, %arg6: memref<1x32xf32, #tpu.memory_space<vmem>>, %arg7: memref<1x32xf32, #tpu.memory_space<vmem>>, %arg8: memref<1x32xf32, #tpu.memory_space<vmem>>, %arg9: memref<1x1xf32, #tpu.memory_space<vmem>>, %arg10: memref<16x1xf32, #tpu.memory_space<vmem>>) attributes {dimension_semantics = [#tpu.dimension_semantics<parallel>], iteration_bounds = array<i64: 1>, scalar_prefetch = 0 : i64, scratch_operands = 0 : i64, tpu.core_type = #tpu.core_type<tc>, window_params = [{transform_indices = @transform_0, window_bounds = array<i64: 16, 768>}, {transform_indices = @transform_1, window_bounds = array<i64: 16, 1>}, {pipeline_mode = #tpu.pipeline_mode<synchronous>, transform_indices = @transform_2, window_bounds = array<i64: 768, 256>}, {pipeline_mode = #tpu.pipeline_mode<synchronous>, transform_indices = @transform_3, window_bounds = array<i64: 1, 256>}, {pipeline_mode = #tpu.pipeline_mode<synchronous>, transform_indices = @transform_4, window_bounds = array<i64: 256, 32>}, {pipeline_mode = #tpu.pipeline_mode<synchronous>, transform_indices = @transform_5, window_bounds = array<i64: 1, 32>}, {pipeline_mode = #tpu.pipeline_mode<synchronous>, transform_indices = @transform_6, window_bounds = array<i64: 1, 32>}, {pipeline_mode = #tpu.pipeline_mode<synchronous>, transform_indices = @transform_7, window_bounds = array<i64: 1, 32>}, {pipeline_mode = #tpu.pipeline_mode<synchronous>, transform_indices = @transform_8, window_bounds = array<i64: 1, 1>}, {transform_indices = @transform_9, window_bounds = array<i64: 16, 1>}]} {
    %c0 = arith.constant 0 : index
    %c0_0 = arith.constant 0 : index
    %0 = vector.load %arg1[%c0, %c0_0] : memref<16x768xbf16, #tpu.memory_space<vmem>>, vector<16x768xbf16>
    %c0_1 = arith.constant 0 : index
    %c0_2 = arith.constant 0 : index
    %1 = vector.load %arg3[%c0_1, %c0_2] : memref<768x256xbf16, #tpu.memory_space<vmem>>, vector<768x256xbf16>
    %cst = arith.constant dense<0.000000e+00> : vector<16x256xf32>
    %2 = tpu.matmul %0, %1, %cst {dimension_numbers = #tpu.dot_dimension_numbers<[1], [0], [0], [1], [0, 0, 1, 1], [], []>} : vector<16x768xbf16>, vector<768x256xbf16>, vector<16x256xf32> -> vector<16x256xf32>
    %c0_3 = arith.constant 0 : index
    %c0_4 = arith.constant 0 : index
    %3 = vector.load %arg4[%c0_3, %c0_4] : memref<1x256xf32, #tpu.memory_space<vmem>>, vector<1x256xf32>
    %4 = vector.broadcast %3 : vector<1x256xf32> to vector<16x256xf32>
    %5 = arith.addf %2, %4 : vector<16x256xf32>
    %cst_5 = arith.constant 0.000000e+00 : f32
    %6 = vector.broadcast %cst_5 : f32 to vector<16x256xf32>
    %7 = arith.maximumf %5, %6 : vector<16x256xf32>
    %c0_6 = arith.constant 0 : index
    %c0_7 = arith.constant 0 : index
    %8 = vector.load %arg5[%c0_6, %c0_7] : memref<256x32xf32, #tpu.memory_space<vmem>>, vector<256x32xf32>
    %cst_8 = arith.constant dense<0.000000e+00> : vector<16x32xf32>
    %9 = tpu.matmul %7, %8, %cst_8 {dimension_numbers = #tpu.dot_dimension_numbers<[1], [0], [0], [1], [0, 0, 1, 1], [], []>} : vector<16x256xf32>, vector<256x32xf32>, vector<16x32xf32> -> vector<16x32xf32>
    %c0_9 = arith.constant 0 : index
    %c0_10 = arith.constant 0 : index
    %10 = vector.load %arg2[%c0_9, %c0_10] : memref<16x1xf32, #tpu.memory_space<vmem>>, vector<16x1xf32>
    %c0_11 = arith.constant 0 : index
    %c0_12 = arith.constant 0 : index
    %11 = vector.load %arg6[%c0_11, %c0_12] : memref<1x32xf32, #tpu.memory_space<vmem>>, vector<1x32xf32>
    %12 = vector.broadcast %10 : vector<16x1xf32> to vector<16x32xf32>
    %13 = vector.broadcast %11 : vector<1x32xf32> to vector<16x32xf32>
    %14 = arith.mulf %12, %13 : vector<16x32xf32>
    %15 = arith.addf %9, %14 : vector<16x32xf32>
    %c0_13 = arith.constant 0 : index
    %c0_14 = arith.constant 0 : index
    %16 = vector.load %arg7[%c0_13, %c0_14] : memref<1x32xf32, #tpu.memory_space<vmem>>, vector<1x32xf32>
    %17 = vector.broadcast %16 : vector<1x32xf32> to vector<16x32xf32>
    %18 = arith.addf %15, %17 : vector<16x32xf32>
    %cst_15 = arith.constant 0.000000e+00 : f32
    %19 = vector.broadcast %cst_15 : f32 to vector<16x32xf32>
    %20 = arith.maximumf %18, %19 : vector<16x32xf32>
    %c0_16 = arith.constant 0 : index
    %c0_17 = arith.constant 0 : index
    %21 = vector.load %arg8[%c0_16, %c0_17] : memref<1x32xf32, #tpu.memory_space<vmem>>, vector<1x32xf32>
    %22 = vector.broadcast %21 : vector<1x32xf32> to vector<16x32xf32>
    %23 = arith.mulf %20, %22 : vector<16x32xf32>
    %cst_18 = arith.constant dense<0.000000e+00> : vector<16xf32>
    %24 = vector.multi_reduction <add>, %23, %cst_18 [1] : vector<16x32xf32> to vector<16xf32>
    %25 = vector.shape_cast %24 : vector<16xf32> to vector<16x1xf32>
    %c0_19 = arith.constant 0 : index
    %c0_20 = arith.constant 0 : index
    %26 = vector.load %arg9[%c0_19, %c0_20] : memref<1x1xf32, #tpu.memory_space<vmem>>, vector<1x1xf32>
    %27 = vector.broadcast %26 : vector<1x1xf32> to vector<16x1xf32>
    %28 = arith.addf %25, %27 : vector<16x1xf32>
    %29 = arith.negf %28 : vector<16x1xf32>
    %30 = math.exp %29 : vector<16x1xf32>
    %cst_21 = arith.constant 1.000000e+00 : f32
    %31 = vector.broadcast %cst_21 : f32 to vector<16x1xf32>
    %32 = arith.addf %31, %30 : vector<16x1xf32>
    %33 = arith.divf %31, %32 : vector<16x1xf32>
    %c0_22 = arith.constant 0 : index
    %c0_23 = arith.constant 0 : index
    %34 = vector.load %arg10[%c0_22, %c0_23] : memref<16x1xf32, #tpu.memory_space<vmem>>, vector<16x1xf32>
    tpu.vector_store %arg10[%c0_22, %c0_23], %33 {strides = array<i32>} : memref<16x1xf32, #tpu.memory_space<vmem>>, vector<16x1xf32>,
    return
  }
  func.func @transform_0(%arg0: i32) -> (i32, i32) {
    %c0_i32 = arith.constant 0 : i32
    %c0_i32_0 = arith.constant 0 : i32
    return %arg0, %c0_i32 : i32, i32
  }
  func.func @transform_1(%arg0: i32) -> (i32, i32) {
    %c0_i32 = arith.constant 0 : i32
    %c0_i32_0 = arith.constant 0 : i32
    return %arg0, %c0_i32 : i32, i32
  }
  func.func @transform_2(%arg0: i32) -> (i32, i32) {
    %c0_i32 = arith.constant 0 : i32
    %c0_i32_0 = arith.constant 0 : i32
    %c0_i32_1 = arith.constant 0 : i32
    return %c0_i32, %c0_i32_0 : i32, i32
  }
  func.func @transform_3(%arg0: i32) -> (i32, i32) {
    %c0_i32 = arith.constant 0 : i32
    %c0_i32_0 = arith.constant 0 : i32
    %c0_i32_1 = arith.constant 0 : i32
    return %c0_i32, %c0_i32_0 : i32, i32
  }
  func.func @transform_4(%arg0: i32) -> (i32, i32) {
    %c0_i32 = arith.constant 0 : i32
    %c0_i32_0 = arith.constant 0 : i32
    %c0_i32_1 = arith.constant 0 : i32
    return %c0_i32, %c0_i32_0 : i32, i32
  }
  func.func @transform_5(%arg0: i32) -> (i32, i32) {
    %c0_i32 = arith.constant 0 : i32
    %c0_i32_0 = arith.constant 0 : i32
    %c0_i32_1 = arith.constant 0 : i32
    return %c0_i32, %c0_i32_0 : i32, i32
  }
  func.func @transform_6(%arg0: i32) -> (i32, i32) {
    %c0_i32 = arith.constant 0 : i32
    %c0_i32_0 = arith.constant 0 : i32
    %c0_i32_1 = arith.constant 0 : i32
    return %c0_i32, %c0_i32_0 : i32, i32
  }
  func.func @transform_7(%arg0: i32) -> (i32, i32) {
    %c0_i32 = arith.constant 0 : i32
    %c0_i32_0 = arith.constant 0 : i32
    %c0_i32_1 = arith.constant 0 : i32
    return %c0_i32, %c0_i32_0 : i32, i32
  }
  func.func @transform_8(%arg0: i32) -> (i32, i32) {
    %c0_i32 = arith.constant 0 : i32
    %c0_i32_0 = arith.constant 0 : i32
    %c0_i32_1 = arith.constant 0 : i32
    return %c0_i32, %c0_i32_0 : i32, i32
  }
  func.func @transform_9(%arg0: i32) -> (i32, i32) {
    %c0_i32 = arith.constant 0 : i32
    %c0_i32_0 = arith.constant 0 : i32
    return %arg0, %c0_i32 : i32, i32
  }
}

</mosaic_0001>

<bundles_post_ra>
// kernel: tpu_custom_call.1
= control target key start
LH: loop header
LB: loop body
LE: loop exit
PB: predicated region body
PF: predicated region fallthrough
CT: control target
= control target key end

     0   :  { %s1576_s0 = inlined_call_operand.vmem [shape: bf16[16,768], index: 0, kind: input, shape index: {}]   ;;  %s1577_s1 = inlined_call_operand.vmem [shape: f32[16,1], index: 1, kind: input, shape index: {}]   ;;  %s1578_s2 = inlined_call_operand.hbm [shape: bf16[768,256], index: 2, kind: input, shape index: {}]   ;;  %s1579_s3 = inlined_call_operand.vmem [shape: f32[1,256], index: 3, kind: input, shape index: {}]   ;;  %s1580_s4 = inlined_call_operand.vmem [shape: f32[256,32], index: 4, kind: input, shape index: {}]   ;;  %s1581_s5 = inlined_call_operand.vmem [shape: f32[1,32], index: 5, kind: input, shape index: {}]   ;;  %s1582_s6 = inlined_call_operand.vmem [shape: f32[1,32], index: 6, kind: input, shape index: {}]   ;;  %s1583_s7 = inlined_call_operand.vmem [shape: f32[1,32], index: 7, kind: input, shape index: {}]   ;;  %s1584_s8 = inlined_call_operand.<no memory space> [shape: f32[1,1], index: 8, kind: input, shape index: {}]   ;;  %s1585_s9 = inlined_call_operand.vmem [shape: f32[16,1], index: 9, kind: output, shape index: {}]  }
   0x1   :  { %v14_v0 = vstv %s1584_s8 }
   0x2   :  { %15 = vst [vmem:[#allocation2] sm:$0x1] %v14_v0 }
   0x3   :  { %16 = vsyncpa [#allocation4], 0  ;;  %s1369_s11 = smov [#allocation3]   ;;  %s1345_s15 = scalar_lea.hbm %s1578_s2, 12288 }
   0x4   :  { %s26_s12 = sshll.u32 %s1369_s11, 4  ;;  %p1346_p0 = scmp.ne.s32.totalorder %s1578_s2, %s1345_s15  ;;  %s27_s12 = int_to_ptr.vmem [resolvable:$true] %s26_s12 }
   0x5   :  { %p1349_p1 = scmp.lt.u32.totalorder %s1345_s15, %s1578_s2 }
   0x7   :  { %p1351_p2 = pnand %p1349_p1, %p1346_p0 }
   0x9   :  { %1354 = shalt.err (!%p1351_p2)
}
   0xa   :  { %s1355_s8 = scalar_lea.vmem %s27_s12, 12288  ;;  %p1360_p4 = scmp.lt.s32.totalorder %s27_s12, %s27_s12 }
   0xb   :  { %p1356_p3 = scmp.ne.s32.totalorder %s27_s12, %s1355_s8  ;;  %p1361_p5 = scmp.lt.s32.totalorder %s1355_s8, %s1355_s8 }
   0xd   :  { %p1362_p6 = por %p1361_p5, %p1360_p4 }
   0xf   :  { %p1363_p7 = pnand %p1362_p6, %p1356_p3 }
  0x11   :  { %1366 = shalt.err (!%p1363_p7)
}
  0x12   :  { %s1370_s20 = smov 128   ;;  %s1371_s21 = smov 8  }
  0x13   :  { %32 = dma.hbm_to_vmem [thread:$0]  %s1578_s2, 12288, %s27_s12, [#allocation4], %s1370_s20, %s1370_s20, %s1371_s21  }
  0x14   :  { %1367 = dma.done.wait [#allocation4], 12288  }
  0x15   :  { %1368 = vsyncadd [#allocation4], 4294955008  ;;  %v1184_v1 = vld [vmem:[#allocation3 + $0x104] ss:$8 sps:$4 sm:$0xff]   ;;  %v1186_v2 = vld [vmem:[#allocation3 + $0x100] ss:$8 sps:$4 sm:$0xff]  }
  0x16   :  { %715 = vmatprep.subr.bf16.mxu0 %v1184_v1  ;;  %v1187_v3 = vld [vmem:[#allocation3 + $0x114] ss:$8 sps:$4 sm:$0xff]   ;;  %v1189_v4 = vld [vmem:[#allocation3 + $0x110] ss:$8 sps:$4 sm:$0xff]   ;;  %v1190_v5 = vld [vmem:[#allocation3 + $0x124] ss:$8 sps:$4 sm:$0xff]  }
  0x17   :  { %716 = vmatpush1.bf16.msra.mxu0 %v1186_v2  ;;  %v1192_v6 = vld [vmem:[#allocation3 + $0x120] ss:$8 sps:$4 sm:$0xff]   ;;  %v1193_v7 = vld [vmem:[#allocation3 + $0x134] ss:$8 sps:$4 sm:$0xff]   ;;  %v1195_v8 = vld [vmem:[#allocation3 + $0x130] ss:$8 sps:$4 sm:$0xff]  }
  0x18   :  { %717 = vmatprep.subr.bf16.mxu0 %v1187_v3  ;;  %v1196_v9 = vld [vmem:[#allocation3 + $0x144] ss:$8 sps:$4 sm:$0xff]   ;;  %v1198_v10 = vld [vmem:[#allocation3 + $0x140] ss:$8 sps:$4 sm:$0xff]   ;;  %v1199_v11 = vld [vmem:[#allocation3 + $0x154] ss:$8 sps:$4 sm:$0xff]  }
  0x19   :  { %v1201_v12 = vld [vmem:[#allocation3 + $0x150] ss:$8 sps:$4 sm:$0xff]   ;;  %v1202_v13 = vld [vmem:[#allocation3 + $0x164] ss:$8 sps:$4 sm:$0xff]   ;;  %v1231_v15 = vld [vmem:[#allocation3] ss:$8 sps:$4 sm:$0xff]  }
  0x1a   :  { %v1229_v14 = vld [vmem:[#allocation3 + $0x4] ss:$8 sps:$4 sm:$0xff]   ;;  %v1204_v16 = vld [vmem:[#allocation3 + $0x160] ss:$8 sps:$4 sm:$0xff]   ;;  %v1235_v17 = vld [vmem:[#allocation3 + $0x14] ss:$8 sps:$4 sm:$0xff]  }
  0x1b   :  { %718 = vmatpush1.bf16.msra.mxu0 %v1189_v4  ;;  %672 = vmatprep.subr.bf16.mxu1 %v1229_v14  ;;  %v1237_v18 = vld [vmem:[#allocation3 + $0x10] ss:$8 sps:$4 sm:$0xff]   ;;  %v1205_v19 = vld [vmem:[#allocation3 + $0x174] ss:$8 sps:$4 sm:$0xff]   ;;  %v1240_v20 = vld [vmem:[%s1576_s0 + $0xc] ss:$24 sps:$4 sm:$0xff]  }
  0x1c   :  { %719 = vmatprep.subr.bf16.mxu0 %v1190_v5  ;;  %673 = vmatpush1.bf16.msra.mxu1 %v1231_v15  ;;  %v1207_v21 = vld [vmem:[#allocation3 + $0x170] ss:$8 sps:$4 sm:$0xff]   ;;  %v1244_v22 = vld [vmem:[#allocation3 + $0x24] ss:$8 sps:$4 sm:$0xff]   ;;  %v1246_v23 = vld [vmem:[#allocation3 + $0x20] ss:$8 sps:$4 sm:$0xff]  }
  0x1d   :  { %674 = vmatprep.subr.bf16.mxu1 %v1235_v17  ;;  %v1208_v24 = vld [vmem:[#allocation3 + $0x184] ss:$8 sps:$4 sm:$0xff]   ;;  %747 = vmatprep.mubr.bf16.mxu0 %v1240_v20  ;;  %v1210_v25 = vld [vmem:[#allocation3 + $0x180] ss:$8 sps:$4 sm:$0xff]   ;;  %v1250_v26 = vld [vmem:[#allocation3 + $0x34] ss:$8 sps:$4 sm:$0xff]  }
  0x1e   :  { %v1211_v27 = vld [vmem:[#allocation3 + $0x194] ss:$8 sps:$4 sm:$0xff]   ;;  %v1252_v28 = vld [vmem:[#allocation3 + $0x30] ss:$8 sps:$4 sm:$0xff]   ;;  %v1256_v29 = vld [vmem:[#allocation3 + $0x44] ss:$8 sps:$4 sm:$0xff]  }
  0x1f   :  { %720 = vmatpush1.bf16.msra.mxu0 %v1192_v6  ;;  %v1213_v30 = vld [vmem:[#allocation3 + $0x190] ss:$8 sps:$4 sm:$0xff]   ;;  %v1214_v31 = vld [vmem:[#allocation3 + $0x1a4] ss:$8 sps:$4 sm:$0xff]   ;;  %v1258_v32 = vld [vmem:[#allocation3 + $0x40] ss:$8 sps:$4 sm:$0xff]  }
  0x20   :  { %721 = vmatprep.subr.bf16.mxu0 %v1193_v7  ;;  %675 = vmatpush1.bf16.msra.mxu1 %v1237_v18  ;;  %v1262_v33 = vld [vmem:[#allocation3 + $0x54] ss:$8 sps:$4 sm:$0xff]   ;;  %v1216_v34 = vld [vmem:[#allocation3 + $0x1a0] ss:$8 sps:$4 sm:$0xff]   ;;  %v1264_v36 = vld [vmem:[#allocation3 + $0x50] ss:$8 sps:$4 sm:$0xff]  }
  0x21   :  { %676 = vmatprep.subr.bf16.mxu1 %v1244_v22  ;;  %v1217_v35 = vld [vmem:[#allocation3 + $0x1b4] ss:$8 sps:$4 sm:$0xff]   ;;  %v1268_v37 = vld [vmem:[#allocation3 + $0x64] ss:$8 sps:$4 sm:$0xff]   ;;  %v1219_v38 = vld [vmem:[#allocation3 + $0x1b0] ss:$8 sps:$4 sm:$0xff]  }
  0x22   :  { %v1220_v39 = vld [vmem:[#allocation3 + $0x1c4] ss:$8 sps:$4 sm:$0xff]   ;;  %v1270_v40 = vld [vmem:[#allocation3 + $0x60] ss:$8 sps:$4 sm:$0xff]   ;;  %v1274_v41 = vld [vmem:[#allocation3 + $0x74] ss:$8 sps:$4 sm:$0xff]  }
  0x23   :  { %722 = vmatpush1.bf16.msra.mxu0 %v1195_v8  ;;  %v1222_v42 = vld [vmem:[#allocation3 + $0x1c0] ss:$8 sps:$4 sm:$0xff]   ;;  %v1223_v43 = vld [vmem:[#allocation3 + $0x1d4] ss:$8 sps:$4 sm:$0xff]   ;;  %v1276_v44 = vld [vmem:[#allocation3 + $0x70] ss:$8 sps:$4 sm:$0xff]  }
  0x24   :  { %723 = vmatprep.subr.bf16.mxu0 %v1196_v9  ;;  %677 = vmatpush1.bf16.msra.mxu1 %v1246_v23  ;;  %v1280_v45 = vld [vmem:[#allocation3 + $0x84] ss:$8 sps:$4 sm:$0xff]   ;;  %v1225_v46 = vld [vmem:[#allocation3 + $0x1d0] ss:$8 sps:$4 sm:$0xff]   ;;  %v1282_v48 = vld [vmem:[#allocation3 + $0x80] ss:$8 sps:$4 sm:$0xff]  }
  0x25   :  { %678 = vmatprep.subr.bf16.mxu1 %v1250_v26  ;;  %v1226_v47 = vld [vmem:[#allocation3 + $0x1e4] ss:$8 sps:$4 sm:$0xff]   ;;  %v1286_v49 = vld [vmem:[#allocation3 + $0x94] ss:$8 sps:$4 sm:$0xff]   ;;  %v1228_v50 = vld [vmem:[#allocation3 + $0x1e0] ss:$8 sps:$4 sm:$0xff]  }
  0x26   :  { %v1232_v51 = vld [vmem:[#allocation3 + $0x1f4] ss:$8 sps:$4 sm:$0xff]   ;;  %v1288_v52 = vld [vmem:[#allocation3 + $0x90] ss:$8 sps:$4 sm:$0xff]   ;;  %v1292_v53 = vld [vmem:[#allocation3 + $0xa4] ss:$8 sps:$4 sm:$0xff]  }
  0x27   :  { %724 = vmatpush1.bf16.msra.mxu0 %v1198_v10  ;;  %v1234_v54 = vld [vmem:[#allocation3 + $0x1f0] ss:$8 sps:$4 sm:$0xff]   ;;  %v1243_v55 = vld [vmem:[#allocation3 + $0x204] ss:$8 sps:$4 sm:$0xff]   ;;  %v1294_v56 = vld [vmem:[#allocation3 + $0xa0] ss:$8 sps:$4 sm:$0xff]  }
  0x28   :  { %725 = vmatprep.subr.bf16.mxu0 %v1199_v11  ;;  %679 = vmatpush1.bf16.msra.mxu1 %v1252_v28  ;;  %v1298_v57 = vld [vmem:[#allocation3 + $0xb4] ss:$8 sps:$4 sm:$0xff]   ;;  %v1241_v59 = vld [vmem:[#allocation3 + $0x200] ss:$8 sps:$4 sm:$0xff]   ;;  %v1300_v61 = vld [vmem:[#allocation3 + $0xb0] ss:$8 sps:$4 sm:$0xff]  }
  0x29   :  { %680 = vmatprep.subr.bf16.mxu1 %v1256_v29  ;;  %v1238_v58 = vld [vmem:[%s1576_s0 + $0x8] ss:$24 sps:$4 sm:$0xff]   ;;  %v1330_v63 = vld [vmem:[%s1576_s0 + $0x4] ss:$24 sps:$4 sm:$0xff]   ;;  %v1336_v2 = vld [vmem:[%s1576_s0 + $0x14] ss:$24 sps:$4 sm:$0xff]  }
  0x2a   :  { %v1249_v60 = vld [vmem:[#allocation3 + $0x214] ss:$8 sps:$4 sm:$0xff]   ;;  %v1304_v62 = vld [vmem:[#allocation3 + $0xc4] ss:$8 sps:$4 sm:$0xff]   ;;  %v1247_v0 = vld [vmem:[#allocation3 + $0x210] ss:$8 sps:$4 sm:$0xff]   ;;  %704 = vmatprep.mubr.bf16.mxu1 %v1330_v63 }
  0x2b   :  { %726 = vmatpush1.bf16.msra.mxu0 %v1201_v12  ;;  %v1306_v1 = vld [vmem:[#allocation3 + $0xc0] ss:$8 sps:$4 sm:$0xff]   ;;  %v1255_v3 = vld [vmem:[#allocation3 + $0x224] ss:$8 sps:$4 sm:$0xff]   ;;  %v1310_v4 = vld [vmem:[#allocation3 + $0xd4] ss:$8 sps:$4 sm:$0xff]  }
  0x2c   :  { %727 = vmatprep.subr.bf16.mxu0 %v1202_v13  ;;  %681 = vmatpush1.bf16.msra.mxu1 %v1258_v32  ;;  %v1253_v5 = vld [vmem:[#allocation3 + $0x220] ss:$8 sps:$4 sm:$0xff]   ;;  %v1312_v6 = vld [vmem:[#allocation3 + $0xd0] ss:$8 sps:$4 sm:$0xff]   ;;  %v1261_v7 = vld [vmem:[#allocation3 + $0x234] ss:$8 sps:$4 sm:$0xff]  }
  0x2d   :  { %682 = vmatprep.subr.bf16.mxu1 %v1262_v33  ;;  %v1316_v8 = vld [vmem:[#allocation3 + $0xe4] ss:$8 sps:$4 sm:$0xff]   ;;  %v1259_v9 = vld [vmem:[#allocation3 + $0x230] ss:$8 sps:$4 sm:$0xff]   ;;  %v1318_v10 = vld [vmem:[#allocation3 + $0xe0] ss:$8 sps:$4 sm:$0xff]  }
  0x2e   :  { %v1267_v11 = vld [vmem:[#allocation3 + $0x244] ss:$8 sps:$4 sm:$0xff]   ;;  %v1322_v12 = vld [vmem:[#allocation3 + $0xf4] ss:$8 sps:$4 sm:$0xff]   ;;  %v1265_v15 = vld [vmem:[#allocation3 + $0x240] ss:$8 sps:$4 sm:$0xff]  }
  0x2f   :  { %728 = vmatpush1.bf16.msra.mxu0 %v1204_v16  ;;  %v821_v13 = vld [vmem:[%s1580_s4 + $0x80] sm:$0xff]  ;;  %v822_v14 = vld [vmem:[%s1580_s4 + $0x88] sm:$0xff]  ;;  %v1324_v16 = vld [vmem:[#allocation3 + $0xf0] ss:$8 sps:$4 sm:$0xff]   ;;  %vm953_vm0 = vcmask 261120   ;;  %vm981_vm1 = vcmask 7168  }
  0x30   :  { %729 = vmatprep.subr.bf16.mxu0 %v1205_v19  ;;  %683 = vmatpush1.bf16.msra.mxu1 %v1264_v36  ;;  %v1273_v17 = vld [vmem:[#allocation3 + $0x254] ss:$8 sps:$4 sm:$0xff]   ;;  %v1135_v18 = vpack.c.bf16 %v822_v14, %v821_v13  ;;  %v806_v20 = vld [vmem:[%s1580_s4 + $0x8] sm:$0xff]  ;;  %v1319_v63 = vld [vmem:[#allocation3 + $0x2d0] ss:$8 sps:$4 sm:$0xff]  }
  0x31   :  { %684 = vmatprep.subr.bf16.mxu1 %v1268_v37  ;;  %v805_v19 = vld [vmem:[%s1580_s4] sm:$0xff]  ;;  %v824_v22 = vld [vmem:[%s1580_s4 + $0x98] sm:$0xff]  ;;  %v807_v28 = vld [vmem:[%s1580_s4 + $0x10] sm:$0xff] }
  0x32   :  { %v1328_v23 = vld [vmem:[%s1576_s0] ss:$24 sps:$4 sm:$0xff]   ;;  %v1279_v26 = vld [vmem:[#allocation3 + $0x264] ss:$8 sps:$4 sm:$0xff]  }
  0x33   :  { %730 = vmatpush1.bf16.msra.mxu0 %v1207_v21  ;;  %v823_v21 = vld [vmem:[%s1580_s4 + $0x90] sm:$0xff]  ;;  %v808_v29 = vld [vmem:[%s1580_s4 + $0x18] sm:$0xff]  ;;  %v1277_v32 = vld [vmem:[#allocation3 + $0x260] ss:$8 sps:$4 sm:$0xff]  }
  0x34   :  { %731 = vmatprep.subr.bf16.mxu0 %v1208_v24  ;;  %685 = vmatpush1.bf16.msra.mxu1 %v1270_v40  ;;  %v1271_v24 = vld [vmem:[#allocation3 + $0x250] ss:$8 sps:$4 sm:$0xff]   ;;  %v1141_v33 = vpack.c.bf16 %v808_v29, %v807_v28  ;;  %v809_v36 = vld [vmem:[%s1580_s4 + $0x20] sm:$0xff]  ;;  %v810_v37 = vld [vmem:[%s1580_s4 + $0x28] sm:$0xff] }
  0x35   :  { %686 = vmatprep.subr.bf16.mxu1 %v1274_v41  ;;  %v1283_v40 = vld [vmem:[#allocation3 + $0x270] ss:$8 sps:$4 sm:$0xff]   ;;  %v1145_v41 = vpack.c.bf16 %v810_v37, %v809_v36  ;;  %v817_v14 = vld [vmem:[%s1580_s4 + $0x60] sm:$0xff] }
  0x37   :  { %732 = vmatpush1.bf16.msra.mxu0 %v1210_v25  ;;  %v1137_v25 = vpack.c.bf16 %v806_v20, %v805_v19  ;;  %v819_v20 = vld [vmem:[%s1580_s4 + $0x70] sm:$0xff] }
  0x38   :  { %733 = vmatprep.subr.bf16.mxu0 %v1211_v27  ;;  %687 = vmatpush1.bf16.msra.mxu1 %v1276_v44  ;;  %v1139_v27 = vpack.c.bf16 %v824_v22, %v823_v21  ;;  %v811_v44 = vld [vmem:[%s1580_s4 + $0x30] sm:$0xff]  ;;  %v820_v21 = vld [vmem:[%s1580_s4 + $0x78] sm:$0xff] }
  0x39   :  { %688 = vmatprep.subr.bf16.mxu1 %v1280_v45  ;;  %v812_v45 = vld [vmem:[%s1580_s4 + $0x38] sm:$0xff]  ;;  %v1165_v22 = vpack.c.bf16 %v820_v21, %v819_v20 }
  0x3b   :  { %734 = vmatpush1.bf16.msra.mxu0 %v1213_v30  ;;  %v825_v30 = vld [vmem:[%s1580_s4 + $0xa0] sm:$0xff] }
  0x3c   :  { %735 = vmatprep.subr.bf16.mxu0 %v1214_v31  ;;  %689 = vmatpush1.bf16.msra.mxu1 %v1282_v48  ;;  %v826_v31 = vld [vmem:[%s1580_s4 + $0xa8] sm:$0xff] }
  0x3d   :  { %690 = vmatprep.subr.bf16.mxu1 %v1286_v49  ;;  %v1289_v48 = vld [vmem:[#allocation3 + $0x280] ss:$8 sps:$4 sm:$0xff]   ;;  %v1149_v49 = vpack.c.bf16 %v812_v45, %v811_v44 }
  0x3f   :  { %736 = vmatpush1.bf16.msra.mxu0 %v1216_v34  ;;  %v1285_v34 = vld [vmem:[#allocation3 + $0x274] ss:$8 sps:$4 sm:$0xff]  }
  0x40   :  { %737 = vmatprep.subr.bf16.mxu0 %v1217_v35  ;;  %691 = vmatpush1.bf16.msra.mxu1 %v1288_v52  ;;  %v1143_v35 = vpack.c.bf16 %v826_v31, %v825_v30  ;;  %v813_v52 = vld [vmem:[%s1580_s4 + $0x40] sm:$0xff]  ;;  %v152_v30 = vlaneseq }
  0x41   :  { %692 = vmatprep.subr.bf16.mxu1 %v1292_v53  ;;  %v814_v53 = vld [vmem:[%s1580_s4 + $0x48] sm:$0xff] }
  0x42   :  { %v153_v31 = vshrl.u32 %v152_v30, 7 }
  0x43   :  { %738 = vmatpush1.bf16.msra.mxu0 %v1219_v38  ;;  %v827_v38 = vld [vmem:[%s1580_s4 + $0xb0] sm:$0xff] }
  0x44   :  { %739 = vmatprep.subr.bf16.mxu0 %v1220_v39  ;;  %693 = vmatpush1.bf16.msra.mxu1 %v1294_v56  ;;  %v828_v39 = vld [vmem:[%s1580_s4 + $0xb8] sm:$0xff]  ;;  %v1303_v56 = vld [vmem:[#allocation3 + $0x2a4] ss:$8 sps:$4 sm:$0xff]  }
  0x45   :  { %694 = vmatprep.subr.bf16.mxu1 %v1298_v57  ;;  %v1301_v57 = vld [vmem:[#allocation3 + $0x2a0] ss:$8 sps:$4 sm:$0xff]  }
  0x47   :  { %740 = vmatpush1.bf16.msra.mxu0 %v1222_v42  ;;  %v1291_v42 = vld [vmem:[#allocation3 + $0x284] ss:$8 sps:$4 sm:$0xff]  }
  0x48   :  { %741 = vmatprep.subr.bf16.mxu0 %v1223_v43  ;;  %695 = vmatpush1.bf16.msra.mxu1 %v1300_v61  ;;  %v1147_v43 = vpack.c.bf16 %v828_v39, %v827_v38  ;;  %v1313_v61 = vld [vmem:[#allocation3 + $0x2c0] ss:$8 sps:$4 sm:$0xff]  }
  0x49   :  { %696 = vmatprep.subr.bf16.mxu1 %v1304_v62  ;;  %v1321_v62 = vld [vmem:[#allocation3 + $0x2d4] ss:$8 sps:$4 sm:$0xff]  }
  0x4b   :  { %742 = vmatpush1.bf16.msra.mxu0 %v1225_v46  ;;  %v829_v46 = vld [vmem:[%s1580_s4 + $0xc0] sm:$0xff] }
  0x4c   :  { %743 = vmatprep.subr.bf16.mxu0 %v1226_v47  ;;  %697 = vmatpush1.bf16.msra.mxu1 %v1306_v1  ;;  %v830_v47 = vld [vmem:[%s1580_s4 + $0xc8] sm:$0xff] }
  0x4d   :  { %698 = vmatprep.subr.bf16.mxu1 %v1310_v4  ;;  %v1325_v1 = vld [vmem:[#allocation3 + $0x2e0] ss:$8 sps:$4 sm:$0xff]  }
  0x4e   :  { %v1334_v4 = vld [vmem:[%s1576_s0 + $0x10] ss:$24 sps:$4 sm:$0xff]  }
  0x4f   :  { %744 = vmatpush1.bf16.msra.mxu0 %v1228_v50  ;;  %v1297_v50 = vld [vmem:[#allocation3 + $0x294] ss:$8 sps:$4 sm:$0xff]  }
  0x50   :  { %745 = vmatprep.subr.bf16.mxu0 %v1232_v51  ;;  %699 = vmatpush1.bf16.msra.mxu1 %v1312_v6  ;;  %v1151_v51 = vpack.c.bf16 %v830_v47, %v829_v46  ;;  %v832_v6 = vld [vmem:[%s1580_s4 + $0xd8] sm:$0xff] }
  0x51   :  { %700 = vmatprep.subr.bf16.mxu1 %v1316_v8  ;;  %v815_v8 = vld [vmem:[%s1580_s4 + $0x50] sm:$0xff] }
  0x53   :  { %746 = vmatpush1.bf16.msra.mxu0 %v1234_v54  ;;  %v1295_v54 = vld [vmem:[#allocation3 + $0x290] ss:$8 sps:$4 sm:$0xff]  }
  0x54   :  { %758 = vmatprep.subr.bf16.mxu0 %v1243_v55  ;;  %701 = vmatpush1.bf16.msra.mxu1 %v1318_v10  ;;  %v1153_v55 = vpack.c.bf16 %v814_v53, %v813_v52  ;;  %v1091_v53 = vld [vmem:[%s1581_s5] ss:$0 sm:$0xff] }
  0x55   :  { %702 = vmatprep.subr.bf16.mxu1 %v1322_v12  ;;  %v834_v12 = vld [vmem:[%s1580_s4 + $0xe8] sm:$0xff] }
  0x56   :  { %748 = vmatmul.mubr.bf16.vlgmr.msra.gmra.mrb[0].mxu0 %v1238_v58  ;;  %v1309_v58 = vld [vmem:[#allocation3 + $0x2b4] ss:$8 sps:$4 sm:$0xff]  }
  0x57   :  { %759 = vmatpush1.bf16.msra.mxu0 %v1241_v59  ;;  %790 = vmatprep.mubr.bf16.mxu0 %v1336_v2  ;;  %v1307_v59 = vld [vmem:[#allocation3 + $0x2b0] ss:$8 sps:$4 sm:$0xff]   ;;  %v1333_v2 = vld [vmem:[#allocation3 + $0x2f4] ss:$8 sps:$4 sm:$0xff]  }
  0x58   :  { %760 = vmatprep.subr.bf16.mxu0 %v1249_v60  ;;  %703 = vmatpush1.bf16.msra.mxu1 %v1324_v16  ;;  %v1315_v60 = vld [vmem:[#allocation3 + $0x2c4] ss:$8 sps:$4 sm:$0xff]  }
  0x59   :  { %1136 = vmatprep.subr.bf16.mxu1 %v1135_v18  ;;  %v836_v18 = vld [vmem:[%s1580_s4 + $0xf8] sm:$0xff] }
  0x5b   :  { %761 = vmatpush1.bf16.msra.mxu0 %v1247_v0  ;;  %705 = vmatmul.mubr.bf16.vlgmr.msra.gmra.mrb[0].mxu1 %v1328_v23  ;;  %v1327_v0 = vld [vmem:[#allocation3 + $0x2e4] ss:$8 sps:$4 sm:$0xff]  }
  0x5c   :  { %762 = vmatprep.subr.bf16.mxu0 %v1255_v3  ;;  %1138 = vmatpush3.bf16.msra.mxu1 %v1137_v25  ;;  %v1331_v3 = vld [vmem:[#allocation3 + $0x2f0] ss:$8 sps:$4 sm:$0xff]   ;;  %v837_v23 = vld [vmem:[%s1577_s1] sm:$0xff]  ;;  %v838_v25 = vld [vmem:[%s1577_s1 + $0x8] sm:$0xff] }
  0x5d   :  { %1140 = vmatprep.subr.bf16.mxu1 %v1139_v27 }
  0x5f   :  { %763 = vmatpush1.bf16.msra.mxu0 %v1253_v5  ;;  %v831_v5 = vld [vmem:[%s1580_s4 + $0xd0] sm:$0xff] }
  0x60   :  { %764 = vmatprep.subr.bf16.mxu0 %v1261_v7  ;;  %1142 = vmatpush3.bf16.msra.mxu1 %v1141_v33  ;;  %v1155_v7 = vpack.c.bf16 %v832_v6, %v831_v5  ;;  %v150_v33 = vld [vmem:[%s1579_s3] sm:$0x3] }
  0x61   :  { %1144 = vmatprep.subr.bf16.mxu1 %v1143_v35 }
  0x63   :  { %765 = vmatpush1.bf16.msra.mxu0 %v1259_v9  ;;  %v816_v9 = vld [vmem:[%s1580_s4 + $0x58] sm:$0xff] }
  0x64   :  { %766 = vmatprep.subr.bf16.mxu0 %v1267_v11  ;;  %1146 = vmatpush3.bf16.msra.mxu1 %v1145_v41  ;;  %v1157_v10 = vpack.c.bf16 %v816_v9, %v815_v8  ;;  %v833_v11 = vld [vmem:[%s1580_s4 + $0xe0] sm:$0xff] }
  0x65   :  { %1148 = vmatprep.subr.bf16.mxu1 %v1147_v43  ;;  %v1159_v13 = vpack.c.bf16 %v834_v12, %v833_v11  ;;  %v1094_v12 = vld [vmem:[#allocation2] ss:$0 sm:$0xff] }
  0x67   :  { %767 = vmatpush1.bf16.msra.mxu0 %v1265_v15  ;;  %v818_v15 = vld [vmem:[%s1580_s4 + $0x68] sm:$0xff] }
  0x68   :  { %768 = vmatprep.subr.bf16.mxu0 %v1273_v17  ;;  %1150 = vmatpush3.bf16.msra.mxu1 %v1149_v49  ;;  %v1161_v16 = vpack.c.bf16 %v818_v15, %v817_v14  ;;  %v835_v17 = vld [vmem:[%s1580_s4 + $0xf0] sm:$0xff] }
  0x69   :  { %1152 = vmatprep.subr.bf16.mxu1 %v1151_v51  ;;  %v1163_v19 = vpack.c.bf16 %v836_v18, %v835_v17 }
  0x6b   :  { %769 = vmatpush1.bf16.msra.mxu0 %v1271_v24  ;;  %v1372_v24 = vmov 0  }
  0x6c   :  { %770 = vmatprep.subr.bf16.mxu0 %v1279_v26  ;;  %1154 = vmatpush3.bf16.msra.mxu1 %v1153_v55 }
  0x6d   :  { %1156 = vmatprep.subr.bf16.mxu1 %v1155_v7  ;;  %1183 = vset.pattern.permute.xlu0 %v1372_v24 }
  0x6e   :  { %842 = vperm.xlu0 %1183, %v837_v23  }
  0x6f   :  { %771 = vmatpush1.bf16.msra.mxu0 %v1277_v32  ;;  %v154_v32 = vsub.s32 0, %v153_v31 }
  0x70   :  { %772 = vmatprep.subr.bf16.mxu0 %v1285_v34  ;;  %1158 = vmatpush3.bf16.msra.mxu1 %v1157_v10  ;;  %v158_v34 = vsub.s32 1, %v153_v31 }
  0x71   :  { %1160 = vmatprep.subr.bf16.mxu1 %v1159_v13  ;;  %v155_v35 = vrot.slane %v150_v33, %v154_v32 }
  0x72   :  { %847 = vperm.xlu0 %1183, %v838_v25   ;;  %v159_v36 = vrot.slane %v150_v33, %v158_v34 }
  0x73   :  { %773 = vmatpush1.bf16.msra.mxu0 %v1283_v40 }
  0x74   :  { %774 = vmatprep.subr.bf16.mxu0 %v1291_v42  ;;  %1162 = vmatpush3.bf16.msra.mxu1 %v1161_v16 }
  0x75   :  { %1164 = vmatprep.subr.bf16.mxu1 %v1163_v19 }
  0x77   :  { %775 = vmatpush1.bf16.msra.mxu0 %v1289_v48 }
  0x78   :  { %776 = vmatprep.subr.bf16.mxu0 %v1297_v50  ;;  %1166 = vmatpush3.bf16.msra.mxu1 %v1165_v22 }
  0x7b   :  { %777 = vmatpush1.bf16.msra.mxu0 %v1295_v54 }
  0x7c   :  { %778 = vmatprep.subr.bf16.mxu0 %v1303_v56 }
  0x7f   :  { %779 = vmatpush1.bf16.msra.mxu0 %v1301_v57 }
  0x80   :  { %780 = vmatprep.subr.bf16.mxu0 %v1309_v58 }
  0x83   :  { %781 = vmatpush1.bf16.msra.mxu0 %v1307_v59 }
  0x84   :  { %782 = vmatprep.subr.bf16.mxu0 %v1315_v60  ;;  %v1092_v60 = vld [vmem:[%s1582_s6] ss:$0 sm:$0xff] }
  0x87   :  { %783 = vmatpush1.bf16.msra.mxu0 %v1313_v61 }
  0x88   :  { %784 = vmatprep.subr.bf16.mxu0 %v1321_v62 }
  0x8b   :  { %785 = vmatpush1.bf16.msra.mxu0 %v1319_v63 }
  0x8c   :  { %786 = vmatprep.subr.bf16.mxu0 %v1327_v0 }
  0x8f   :  { %787 = vmatpush1.bf16.msra.mxu0 %v1325_v1 }
  0x90   :  { %788 = vmatprep.subr.bf16.mxu0 %v1333_v2 }
  0x93   :  { %789 = vmatpush1.bf16.msra.mxu0 %v1331_v3  ;;  %v1093_v3 = vld [vmem:[%s1583_s7] ss:$0 sm:$0xff] }
  0x96   :  { %791 = vmatmul.mubr.bf16.vlgmr.msra.gmra.mrb[0].mxu0 %v1334_v4 }
  0xed   :  { %v843_v54 = vpop.permute.xlu0 %842 }
  0xee   :  { %v856_v55 = vmul.f32 %v1091_v53, %v843_v54 }
  0xf1   :  { %v848_v59 = vpop.permute.xlu0 %847 }
  0xf2   :  { %v857_v0 = vmul.f32 %v1091_v53, %v848_v59 }
 0x12e   :  { %v706_v26 = vpop.f32.mrb[0].mxu1 }
 0x12f   :  { %v708_v27 = vpop.f32.mrb[1].mxu1  ;;  %v707_v37 = vadd.f32 %v706_v26, %v155_v35 }
 0x130   :  { %v710_v28 = vpop.f32.mrb[2].mxu1  ;;  %v709_v38 = vadd.f32 %v708_v27, %v159_v36 }
 0x131   :  { %v712_v29 = vpop.f32.mrb[3].mxu1  ;;  %v711_v40 = vadd.f32 %v710_v28, %v155_v35 }
 0x132   :  { %v713_v43 = vadd.f32 %v712_v29, %v159_v36 }
 0x169   :  { %v792_v39 = vpop.f32.mrb[0].mxu0 }
 0x16a   :  { %v1168_v41 = vadd.f32 %v792_v39, %v707_v37  ;;  %v794_v42 = vpop.f32.mrb[1].mxu0 }
 0x16b   :  { %v1170_v44 = vadd.f32 %v794_v42, %v709_v38  ;;  %v796_v45 = vpop.f32.mrb[2].mxu0 }
 0x16c   :  { %v1172_v46 = vadd.f32 %v796_v45, %v711_v40  ;;  %v798_v47 = vpop.f32.mrb[3].mxu0  ;;  %v801_v50 = vmax.f32 %v1168_v41, 0.0 }
 0x16d   :  { %v802_v48 = vmax.f32 %v1170_v44, 0.0  ;;  %v1174_v49 = vadd.f32 %v798_v47, %v713_v43 }
 0x16e   :  { %v803_v52 = vmax.f32 %v1172_v46, 0.0 }
 0x16f   :  { %v804_v51 = vmax.f32 %v1174_v49, 0.0  ;;  %922 = vmatprep.mubr.f32.mxu1 %v802_v48 }
 0x170   :  { %923 = vmatmul.mubr.f32.vlgmr.msra.gmra.mrb[4].mxu1 %v801_v50 }
 0x171   :  { %927 = vmatprep.mubr.f32.mxu1 %v804_v51 }
 0x174   :  { %928 = vmatmul.mubr.f32.gmra.mrb[6].mxu1 %v803_v52 }
 0x243   :  { %v1129_v56 = vpop.f32.mrb[4].mxu1 }
 0x244   :  { %v1130_v57 = vpop.f32.mrb[5].mxu1 }
 0x245   :  { %v1131_v58 = vadd.f32 %v1130_v57, %v1129_v56 }
 0x247   :  { %v925_v61 = vadd.f32 %v1131_v58, %v856_v55  ;;  %v1132_v62 = vpop.f32.mrb[6].mxu1 }
 0x248   :  { %v1133_v63 = vpop.f32.mrb[7].mxu1 }
 0x249   :  { %v1134_v1 = vadd.f32 %v1133_v63, %v1132_v62  ;;  %v940_v2 = vadd.f32 %v1092_v60, %v925_v61 }
 0x24b   :  { %v930_v4 = vadd.f32 %v1134_v1, %v857_v0  ;;  %v942_v5 = vmax.f32 %v940_v2, 0.0 }
 0x24d   :  { %v941_v6 = vadd.f32 %v1092_v60, %v930_v4  ;;  %v951_v7 = vmul.f32 %v1093_v3, %v942_v5 }
 0x24f   :  { %v954_v8 = vsel %vm953_vm0, %v951_v7, 0.0  ;;  %v943_v9 = vmax.f32 %v941_v6, 0.0 }
 0x250   :  { %955 = vadd.xlane.f32.xlu1 %v954_v8 }
 0x251   :  { %v952_v10 = vmul.f32 %v1093_v3, %v943_v9 }
 0x253   :  { %v957_v11 = vsel %vm953_vm0, %v952_v10, 0.0 }
 0x254   :  { %958 = vadd.xlane.f32.xlu1 %v957_v11 }
 0x2dd   :  { %v956_v13 = vpop.xlane.xlu1 %955 }
 0x2de   :  { %v967_v14 = vadd.f32 %v1094_v12, %v956_v13 }
 0x2e0   :  { %v1095_v15 = vmul.f32 -1.442695, %v967_v14 }
 0x2e1   :  { %v959_v16 = vpop.xlane.xlu1 %958 }
 0x2e2   :  { %1337 = vpow2.f32 %v1095_v15  ;;  %v968_v17 = vadd.f32 %v1094_v12, %v959_v16 }
 0x2e4   :  { %v1096_v18 = vmul.f32 -1.442695, %v968_v17 }
 0x2e6   :  { %1339 = vpow2.f32 %v1096_v18 }
 0x2ec   :  { %v1338_v19 = vpop.eup %1337 }
 0x2ed   :  { %v975_v20 = vadd.f32 1.0, %v1338_v19 }
 0x2ef   :  { %1341 = vrcp.f32 %v975_v20 }
 0x2f0   :  { %v1340_v21 = vpop.eup %1339 }
 0x2f1   :  { %v976_v22 = vadd.f32 1.0, %v1340_v21 }
 0x2f3   :  { %1343 = vrcp.f32 %v976_v22 }
 0x2f9   :  { %v1342_v23 = vpop.eup %1341 }
 0x2fa   :  { %982 = vst.msk [vmem:[%s1585_s9] sm:$0xff] %vm981_vm1, %v1342_v23 }
 0x2fd   :  { %v1344_v24 = vpop.eup %1343 }
 0x2fe   :  { %983 = vst.msk [vmem:[%s1585_s9 + $0x8] sm:$0xff] %vm981_vm1, %v1344_v24 }
 0x2ff   :  { %988 = vsyncpa [#allocation4], 1 }

</bundles_post_ra>
